<compile_context>
chip_gen: v7x
topology: tpu7x:2x2x1
jax: 0.10.0
libtpu: 0.0.40
codegen_flags: <defaults>
</compile_context>

<pallas_src>
import functools

import jax
import jax.numpy as jnp
import numpy as np
from jax.experimental import pallas as pl
from jax.experimental.pallas import tpu as pltpu

_BN_EPS = 1e-5  # nn.BatchNorm2d default


# ---------------------------------------------------------------------------
# pltpu.roll convention probe (one-time, cached, runs eagerly on the real
# default backend *before* any compiled use -> cache cannot be poisoned by
# interpret mode in this script).
# ---------------------------------------------------------------------------
def _roll_probe_kernel(x_ref, o_ref):
    o_ref[...] = pltpu.roll(x_ref[...], 1, axis=1)


@functools.lru_cache(maxsize=None)
def _roll_follows_numpy() -> bool:
    x = jnp.broadcast_to(jnp.arange(128, dtype=jnp.float32), (8, 128))
    y = pl.pallas_call(
        _roll_probe_kernel,
        out_shape=jax.ShapeDtypeStruct((8, 128), jnp.float32),
    )(x)
    return bool(y[0, 0] == 127.0)  # numpy convention: roll(x, 1)[0] == x[-1]


# ---------------------------------------------------------------------------
# Fused forward kernel
# ---------------------------------------------------------------------------
def _seg_task_kernel(x_ref, mask_ref,
                     w1_ref, g1_ref, be1_ref,
                     w2_ref, g2_ref, be2_ref,
                     w3_ref, b3_ref,
                     o_ref, stk_ref, *, W, K, L, C_P, roll_np):
    """Conv3x3 -> BN -> ReLU -> Conv3x3 -> BN -> ReLU -> Conv1x1(+bias), fused.

    Layouts (all float32, fully resident in VMEM):
      x_ref    : (C_P, L)           input, channels-major, L = N*H*W on lanes
      mask_ref : (K*K, C_P, L)      0/1 validity mask per conv tap (pre-broadcast)
      w1_ref   : (C_P, K*K*C_P)     stacked conv1 weights (tap-major contraction)
      w2_ref   : (C_P, K*K*C_P)     stacked conv2 weights
      g*_ref   : (C_P, 1) BN gamma ; be*_ref : (C_P, 1) BN beta
      w3_ref   : (C_OUT_P, C_P)     1x1 conv weights ; b3_ref : (C_OUT_P, 1) bias
      o_ref    : (C_OUT_P, L)
      stk_ref  : (K*K*C_P, L)       scratch holding all shifted+masked taps
    """

    def shift(x, s):
        # y[:, p] = x[:, (p + s) mod L]  (XLU lane rotation, off the VALU path)
        amount = (-s) % L if roll_np else s % L
        return pltpu.roll(x, amount, axis=1)

    def conv3x3(x, w_ref):
        # Build the stacked operand, then ONE MXU matmul with contraction K*K*C_P.
        c = K // 2
        for kh in range(K):                       # K*K taps unrolled at trace time
            for kw in range(K):
                t = kh * K + kw
                s = (kh - c) * W + (kw - c)
                if s == 0:                        # center tap: mask is all ones
                    tap = x
                else:
                    tap = shift(x, s) * mask_ref[t]   # mask == implicit zero pad
                stk_ref[t * C_P:(t + 1) * C_P, :] = tap
        return jnp.dot(w_ref[...], stk_ref[...],
                       preferred_element_type=jnp.float32)

    def bn_relu(h, g_ref, be_ref):
        # Training-mode BatchNorm2d: batch mean / biased variance over (N,H,W),
        # which is exactly the lane axis here.  One-pass stats, folded affine.
        inv_l = 1.0 / L
        s1 = jnp.sum(h, axis=1, keepdims=True)
        s2 = jnp.sum(h * h, axis=1, keepdims=True)
        mean = s1 * inv_l
        var = jnp.maximum(s2 * inv_l - mean * mean, 0.0)
        a = g_ref[...] * jax.lax.rsqrt(var + _BN_EPS)
        b = be_ref[...] - mean * a
        return jnp.maximum(h * a + b, 0.0)

    y1 = bn_relu(conv3x3(x_ref[...], w1_ref), g1_ref, be1_ref)
    y2 = bn_relu(conv3x3(y1, w2_ref), g2_ref, be2_ref)
    o_ref[...] = (jnp.dot(w3_ref[...], y2, preferred_element_type=jnp.float32)
                  + b3_ref[...])


# ---------------------------------------------------------------------------
# Host-side helpers (one-time layout plumbing)
# ---------------------------------------------------------------------------
def _round8(n):
    return -(-n // 8) * 8


@functools.lru_cache(maxsize=None)
def _tap_masks_np(n, h, w, k, c_p):
    """(K*K, C_P, N*H*W) 0/1 masks, pre-broadcast over channels.

    Tap (kh, kw) is valid at output pixel (y, x) iff the source pixel
    (y + kh - k//2, x + kw - k//2) lies inside the same image; this implements
    the 'same' zero padding AND kills the flat-roll wrap across image / batch
    boundaries."""
    l = n * h * w
    pos = np.arange(l)
    yy = (pos % (h * w)) // w
    xx = pos % w
    c = k // 2
    masks = np.zeros((k * k, c_p, l), np.float32)
    for kh in range(k):
        for kw in range(k):
            dy, dx = kh - c, kw - c
            valid = ((yy + dy >= 0) & (yy + dy < h)
                     & (xx + dx >= 0) & (xx + dx < w)).astype(np.float32)
            masks[kh * k + kw] = valid[None, :]
    return masks


def prepare_params(params):
    """One-time relayout of PyTorch-shaped parameters into the kernel layout."""
    w1, w2, w3 = params["w1"], params["w2"], params["w3"]
    c_mid, c_in, k, _ = w1.shape
    c_out = w3.shape[0]
    c_p = max(_round8(c_in), _round8(c_mid))
    c_out_p = _round8(c_out)

    def stack(w, ci, co):
        # OIHW -> (K*K, I, O) -> pad channels -> (C_P, K*K*C_P) stacked weights
        wt = jnp.transpose(w, (2, 3, 1, 0)).reshape(k * k, ci, co)
        wt = jnp.pad(wt, ((0, 0), (0, c_p - ci), (0, c_p - co)))
        return wt.reshape(k * k * c_p, c_p).T

    def col(v, cp):
        return jnp.pad(v, (0, cp - v.shape[0])).reshape(cp, 1)

    arrays = dict(
        w1=stack(w1, c_in, c_mid),
        w2=stack(w2, c_mid, c_mid),
        g1=col(params["g1"], c_p), b1=col(params["b1"], c_p),
        g2=col(params["g2"], c_p), b2=col(params["b2"], c_p),
        w3=jnp.pad(w3.reshape(c_out, c_mid),
                   ((0, c_out_p - c_out), (0, c_p - c_mid))),
        b3=col(params["b3"], c_out_p),
    )
    dims = dict(k=k, c_in=c_in, c_mid=c_mid, c_out=c_out,
                c_p=c_p, c_out_p=c_out_p)
    return arrays, dims


def make_segmentation_task(params):
    """Builds a jitted forward(x_nchw) for a fixed parameter set."""
    arrays, dims = prepare_params(params)          # weight relayout: once
    k, c_out = dims["k"], dims["c_out"]
    c_p, c_out_p = dims["c_p"], dims["c_out_p"]
    exp_c_in = dims["c_in"]
    assert k % 2 == 1, "only odd kernel sizes give 'same' padding"
    roll_np = _roll_follows_numpy()                # hardware probe: once

    @jax.jit
    def forward(x_nchw):
        n, c_in, h, w = x_nchw.shape
        assert c_in == exp_c_in, (c_in, exp_c_in)
        l = n * h * w
        assert l % 128 == 0, "N*H*W must be a multiple of 128 (lane-dense layout)"
        # Single-block, fully-VMEM-resident design; guard the working set.
        assert (2 * k * k + 2) * c_p * l * 4 < 24 * 2**20, \
            "working set too large for the single-block kernel (see TODO(synk))"

        # One-time boundary layout plumbing: channels-major, lane-dense spatial.
        x_cl = jnp.transpose(x_nchw, (1, 0, 2, 3)).reshape(c_in, l)
        x_cl = jnp.pad(x_cl, ((0, c_p - c_in), (0, 0)))

        masks = jnp.asarray(_tap_masks_np(n, h, w, k, c_p))  # trace-time const

        kernel = functools.partial(_seg_task_kernel, W=w, K=k, L=l, C_P=c_p,
                                   roll_np=roll_np)
        vmem = pl.BlockSpec(memory_space=pltpu.MemorySpace.VMEM)
        out_cl = pl.pallas_call(
            kernel,
            out_shape=jax.ShapeDtypeStruct((c_out_p, l), jnp.float32),
            in_specs=[vmem] * 10,
            out_specs=vmem,
            scratch_shapes=[pltpu.VMEM((k * k * c_p, l), jnp.float32)],
        )(x_cl, masks,
          arrays["w1"], arrays["g1"], arrays["b1"],
          arrays["w2"], arrays["g2"], arrays["b2"],
          arrays["w3"], arrays["b3"])

        out_cl = out_cl[:c_out]                    # drop sublane padding
        return jnp.transpose(out_cl.reshape(c_out, n, h, w), (1, 0, 2, 3))

    return forward


# ---------------------------------------------------------------------------
# Pure-JAX reference (mirrors the PyTorch module, training-mode BN) for a
# correctness check in __main__.
# ---------------------------------------------------------------------------
def _reference_forward(x, params):
    def conv(x, w, pad):
        return jax.lax.conv_general_dilated(
            x, w, window_strides=(1, 1), padding=pad,
            dimension_numbers=("NCHW", "OIHW", "NCHW"))

    def bn(h, g, b):
        mean = jnp.mean(h, axis=(0, 2, 3), keepdims=True)
        var = jnp.mean(jnp.square(h - mean), axis=(0, 2, 3), keepdims=True)
        return ((h - mean) * jax.lax.rsqrt(var + _BN_EPS)
                * g.reshape(1, -1, 1, 1) + b.reshape(1, -1, 1, 1))

    p1 = ((1, 1), (1, 1))
    h = jax.nn.relu(bn(conv(x, params["w1"], p1), params["g1"], params["b1"]))
    h = jax.nn.relu(bn(conv(h, params["w2"], p1), params["g2"], params["b2"]))
    h = conv(h, params["w3"], ((0, 0), (0, 0))) + params["b3"].reshape(1, -1, 1, 1)
    return h


# ---------------------------------------------------------------------------
# Deterministic parameter init (shapes dictated by the module's __init__)
# ---------------------------------------------------------------------------
def init_params(key, c_in, c_mid, c_out, k=3):
    ks = jax.random.split(key, 8)
    bnd1 = 1.0 / float((c_in * k * k) ** 0.5)
    bnd2 = 1.0 / float((c_mid * k * k) ** 0.5)
    bnd3 = 1.0 / float(c_mid ** 0.5)
    return dict(
        w1=jax.random.uniform(ks[0], (c_mid, c_in, k, k), jnp.float32, -bnd1, bnd1),
        g1=1.0 + 0.1 * jax.random.normal(ks[1], (c_mid,), jnp.float32),
        b1=0.1 * jax.random.normal(ks[2], (c_mid,), jnp.float32),
        w2=jax.random.uniform(ks[3], (c_mid, c_mid, k, k), jnp.float32, -bnd2, bnd2),
        g2=1.0 + 0.1 * jax.random.normal(ks[4], (c_mid,), jnp.float32),
        b2=0.1 * jax.random.normal(ks[5], (c_mid,), jnp.float32),
        w3=jax.random.uniform(ks[6], (c_out, c_mid, 1, 1), jnp.float32, -bnd3, bnd3),
        b3=jax.random.uniform(ks[7], (c_out,), jnp.float32, -bnd3, bnd3),
    )


if __name__ == "__main__":
    # Segmentation_Task(in_channel=4, middle_channel=8, out_channel=4)
    N, C_IN, H, W = 2, 4, 16, 16
    C_MID, C_OUT = 8, 4

    x = jax.random.normal(jax.random.PRNGKey(0), (N, C_IN, H, W), jnp.float32)
    params = init_params(jax.random.PRNGKey(1), C_IN, C_MID, C_OUT)

    forward = make_segmentation_task(params)
    out = forward(x)
    jax.block_until_ready(out)

    assert out.shape == (N, C_OUT, H, W), out.shape
    assert bool(jnp.all(jnp.isfinite(out)))

    ref = _reference_forward(x, params)
    max_err = float(jnp.max(jnp.abs(out - ref)))
    assert max_err < 1e-3, f"max |kernel - reference| = {max_err}"

    print("KERNEL_OK")
</pallas_src>

<mosaic_0001>
module attributes {stable_mosaic.version = 11 : i64} {
  func.func @_roll_probe_kernel(%arg0: memref<8x128xf32, #tpu.memory_space<vmem>>, %arg1: memref<8x128xf32, #tpu.memory_space<vmem>>) attributes {dimension_semantics = [], scalar_prefetch = 0 : i64, scratch_operands = 0 : i64, tpu.core_type = #tpu.core_type<tc>} {
    %c0 = arith.constant 0 : index
    %c0_0 = arith.constant 0 : index
    %0 = vector.load %arg0[%c0, %c0_0] : memref<8x128xf32, #tpu.memory_space<vmem>>, vector<8x128xf32>
    %c1_i32 = arith.constant 1 : i32
    %1 = tpu.dynamic_rotate %0 by %c1_i32 dim 1 : vector<8x128xf32>, i32 -> vector<8x128xf32>
    %c0_1 = arith.constant 0 : index
    %c0_2 = arith.constant 0 : index
    %2 = vector.load %arg1[%c0_1, %c0_2] : memref<8x128xf32, #tpu.memory_space<vmem>>, vector<8x128xf32>
    tpu.vector_store %arg1[%c0_1, %c0_2], %1 {strides = array<i32>} : memref<8x128xf32, #tpu.memory_space<vmem>>, vector<8x128xf32>,
    return
  }
}

</mosaic_0001>

<bundles_post_ra>
// kernel: tpu_custom_call.1
= control target key start
LH: loop header
LB: loop body
LE: loop exit
PB: predicated region body
PF: predicated region fallthrough
CT: control target
= control target key end

     0   :  { %6 = vsyncpa [#allocation3], 0  ;;  %s128_s0 = inlined_call_operand.hbm [shape: f32[8,128], index: 0, kind: input, shape index: {}]   ;;  %s129_s1 = inlined_call_operand.hbm [shape: f32[8,128], index: 1, kind: output, shape index: {}]  }
   0x1   :  { %7 = vsyncpa [#allocation4], 0  ;;  %s91_s6 = smov [#allocation2]   ;;  %s43_s10 = scalar_lea.hbm %s128_s0, 128 }
   0x2   :  { %s14_s7 = sshll.u32 %s91_s6, 4  ;;  %p44_p0 = scmp.ne.s32.totalorder %s128_s0, %s43_s10  ;;  %s15_s7 = int_to_ptr.vmem [resolvable:$true] %s14_s7 }
   0x3   :  { %p47_p1 = scmp.lt.u32.totalorder %s43_s10, %s128_s0 }
   0x5   :  { %p49_p2 = pnand %p47_p1, %p44_p0 }
   0x7   :  { %52 = shalt.err (!%p49_p2)
}
   0x8   :  { %s53_s15 = scalar_lea.vmem %s15_s7, 128  ;;  %p58_p4 = scmp.lt.s32.totalorder %s15_s7, %s15_s7 }
   0x9   :  { %p54_p3 = scmp.ne.s32.totalorder %s15_s7, %s53_s15  ;;  %p59_p5 = scmp.lt.s32.totalorder %s53_s15, %s53_s15 }
   0xb   :  { %p60_p6 = por %p59_p5, %p58_p4 }
   0xd   :  { %p61_p7 = pnand %p60_p6, %p54_p3 }
   0xf   :  { %64 = shalt.err (!%p61_p7)
}
  0x10   :  { %17 = dma.hbm_to_vmem [thread:$0]  %s128_s0, 128, %s15_s7, [#allocation3]  }
  0x11   :  { %87 = dma.done.wait [#allocation3], 128  }
  0x12   :  { %88 = vsyncadd [#allocation3], 4294967168  ;;  %v21_v0 = vld [vmem:[#allocation2] sm:$0xff]  ;;  %s92_s18 = smov 1   ;;  %s93_s19 = smov [#allocation5]  }
  0x13   :  { %22 = vrot.lane.b32.xlu0 %v21_v0, %s92_s18  ;;  %s31_s20 = sshll.u32 %s93_s19, 4  ;;  %s32_s20 = int_to_ptr.vmem [resolvable:$true] %s31_s20 }
  0x14   :  { %s65_s21 = scalar_lea.vmem %s32_s20, 128  ;;  %p70_p9 = scmp.lt.s32.totalorder %s32_s20, %s32_s20 }
  0x15   :  { %p66_p8 = scmp.ne.s32.totalorder %s32_s20, %s65_s21  ;;  %p71_p10 = scmp.lt.s32.totalorder %s65_s21, %s65_s21 }
  0x17   :  { %p72_p11 = por %p71_p10, %p70_p9 }
  0x19   :  { %p73_p12 = pnand %p72_p11, %p66_p8 }
  0x85   :  { %v23_v1 = vpop.permute.xlu0 %22 }
  0x86   :  { %24 = vst [vmem:[#allocation5] sm:$0xff] %v23_v1 }
  0x87   :  { %76 = shalt.err (!%p73_p12)
}
  0x88   :  { %s77_s0 = scalar_lea.hbm %s129_s1, 128 }
  0x89   :  { %p78_p13 = scmp.ne.s32.totalorder %s129_s1, %s77_s0  ;;  %p81_p0 = scmp.lt.u32.totalorder %s77_s0, %s129_s1 }
  0x8b   :  { %p83_p1 = pnand %p81_p0, %p78_p13 }
  0x8d   :  { %86 = shalt.err (!%p83_p1)
}
  0x8e   :  { %34 = dma.vmem_to_hbm [thread:$0]  %s32_s20, 128, %s129_s1, [#allocation4]  }
  0x8f   :  { %89 = dma.done.wait [#allocation4], 128  }
  0x90   :  { %90 = vsyncadd [#allocation4], 4294967168 }
  0x91   :  { %38 = vsyncpa [#allocation3], 1 }
  0x92   :  { %39 = vsyncpa [#allocation4], 1 }

</bundles_post_ra>
